<compile_context>
chip_gen: v5e
topology: v5e:2x2
jax: 0.10.0
libtpu: 0.0.40
codegen_flags: <defaults>
</compile_context>

<pallas_src>
import math

import jax
import jax.numpy as jnp
from jax.experimental import pallas as pl
from jax.experimental.pallas import tpu as pltpu

LEAKY_SLOPE = 0.01   # nn.LeakyReLU() default negative_slope
BN_EPS = 1e-5        # nn.BatchNorm1d default eps
LANE = 128


def _round_up(n, m=LANE):
    return ((n + m - 1) // m) * m


# ------------------------------ Pallas kernel --------------------------------
def _disnet_kernel(x_ref, w1_ref, w2_ref, w3_ref, aux_ref, o_ref):
    """Fully fused DisNet forward: 3 Linears + 2 (LeakyReLU, BatchNorm1d).

    aux_ref rows: 0=b1, 1=g1, 2=beta1, 3=b2, 4=g2, 5=beta2, 6=b3, 7=zeros.
    All widths are lane-padded to 128; padded lanes carry exact zeros.
    """
    inv_b = jnp.float32(1.0 / x_ref.shape[0])

    def bias_leaky_bn(y, b_row, g_row, be_row):
        # bias + LeakyReLU on the f32 accumulator
        y = y + b_row
        y = jnp.where(y >= 0, y, LEAKY_SLOPE * y)
        # one-pass training-mode BatchNorm1d statistics
        s1 = jnp.sum(y, axis=0, keepdims=True)
        s2 = jnp.sum(y * y, axis=0, keepdims=True)
        mu = s1 * inv_b
        var = jnp.maximum(s2 * inv_b - mu * mu, 0.0)   # biased batch variance
        scale = jax.lax.rsqrt(var + BN_EPS) * g_row
        return (y - mu) * scale + be_row

    x = x_ref[...]                                     # bf16 (B, latent)

    # ----- layer 1: Linear -> LeakyReLU -> BN ---------------------------------
    y1 = jnp.dot(x, w1_ref[...], preferred_element_type=jnp.float32)
    h1 = bias_leaky_bn(y1, aux_ref[0:1, :], aux_ref[1:2, :], aux_ref[2:3, :])

    # ----- layer 2: Linear -> LeakyReLU -> BN ---------------------------------
    y2 = jnp.dot(h1.astype(jnp.bfloat16), w2_ref[...],
                 preferred_element_type=jnp.float32)
    h2 = bias_leaky_bn(y2, aux_ref[3:4, :], aux_ref[4:5, :], aux_ref[5:6, :])

    # ----- layer 3: Linear (logits), lane-dense store -------------------------
    y3 = jnp.dot(h2.astype(jnp.bfloat16), w3_ref[...],
                 preferred_element_type=jnp.float32)
    o_ref[...] = y3 + aux_ref[6:7, :]


# ------------------------- one-time parameter prep ---------------------------
def prepare_params(params, latent_size, hidden_channels, private_classes):
    """bf16-cast, pre-transpose, lane-pad and pack params ONCE (outside jit)."""
    h1 = hidden_channels * 16
    h2 = hidden_channels * 8
    lanes = max(_round_up(h1), _round_up(h2), _round_up(private_classes))

    def pad_wT(w, rows, cols):   # w is torch-layout (out, in); store (in, out)
        wt = w.T.astype(jnp.float32)
        out = jnp.zeros((rows, cols), jnp.float32)
        out = out.at[:wt.shape[0], :wt.shape[1]].set(wt)
        return out.astype(jnp.bfloat16)

    def pad_row(v):
        out = jnp.zeros((lanes,), jnp.float32)
        return out.at[:v.shape[0]].set(v.astype(jnp.float32))

    w1t = pad_wT(params['W1'], latent_size, lanes)     # (latent, lanes)
    w2t = pad_wT(params['W2'], lanes, lanes)           # (lanes, lanes)
    w3t = pad_wT(params['W3'], lanes, lanes)           # (lanes, lanes)
    aux = jnp.stack([pad_row(params['b1']), pad_row(params['g1']),
                     pad_row(params['beta1']),
                     pad_row(params['b2']), pad_row(params['g2']),
                     pad_row(params['beta2']),
                     pad_row(params['b3']),
                     jnp.zeros((lanes,), jnp.float32)])  # (8, lanes)
    return {'w1t': w1t, 'w2t': w2t, 'w3t': w3t, 'aux': aux}


# --------------------------------- wrapper ------------------------------------
def disnet_forward(kparams, x, num_classes):
    """DisNet forward pass as a single fused Pallas call (no per-call weight prep)."""
    B = x.shape[0]
    lanes = kparams['aux'].shape[1]

    args = (x.astype(jnp.bfloat16),
            kparams['w1t'], kparams['w2t'], kparams['w3t'], kparams['aux'])

    out = pl.pallas_call(
        _disnet_kernel,
        out_shape=jax.ShapeDtypeStruct((B, lanes), jnp.float32),
        grid=(1,),
        in_specs=[pl.BlockSpec(a.shape, lambda i: (0, 0)) for a in args],
        out_specs=pl.BlockSpec((B, lanes), lambda i: (0, 0)),
        compiler_params=pltpu.CompilerParams(
            dimension_semantics=("arbitrary",),
            vmem_limit_bytes=32 * 1024 * 1024),
    )(*args)
    return out[:, :num_classes]


# ------------------------- pure-JAX reference (check) ------------------------
def disnet_reference(params, x):
    # Mirrors the kernel's bf16 MXU operands so the comparison isolates the
    # Pallas lowering (not the quantization choice).
    def q(t):
        return t.astype(jnp.bfloat16).astype(jnp.float32)

    def fc(h, W, b):
        return q(h) @ q(W).T + b

    def leaky(h):
        return jnp.where(h >= 0, h, LEAKY_SLOPE * h)

    def bn(h, g, be):
        mu = jnp.mean(h, axis=0, keepdims=True)
        var = jnp.mean(jnp.square(h - mu), axis=0, keepdims=True)
        return (h - mu) * jax.lax.rsqrt(var + BN_EPS) * g + be

    h = bn(leaky(fc(x, params['W1'], params['b1'])), params['g1'], params['beta1'])
    h = bn(leaky(fc(h, params['W2'], params['b2'])), params['g2'], params['beta2'])
    return fc(h, params['W3'], params['b3'])


# ------------------------------ parameter init -------------------------------
def init_params(key, latent_size, hidden_channels, private_classes):
    h1, h2 = hidden_channels * 16, hidden_channels * 8
    ks = jax.random.split(key, 6)

    def lin(kw, kb, fan_in, fan_out):  # torch nn.Linear default init
        bound = 1.0 / math.sqrt(fan_in)
        W = jax.random.uniform(kw, (fan_out, fan_in), jnp.float32, -bound, bound)
        b = jax.random.uniform(kb, (fan_out,), jnp.float32, -bound, bound)
        return W, b

    W1, b1 = lin(ks[0], ks[1], latent_size, h1)
    W2, b2 = lin(ks[2], ks[3], h1, h2)
    W3, b3 = lin(ks[4], ks[5], h2, private_classes)
    return {'W1': W1, 'b1': b1,
            'g1': jnp.ones((h1,), jnp.float32), 'beta1': jnp.zeros((h1,), jnp.float32),
            'W2': W2, 'b2': b2,
            'g2': jnp.ones((h2,), jnp.float32), 'beta2': jnp.zeros((h2,), jnp.float32),
            'W3': W3, 'b3': b3}


# ----------------------------------- main -------------------------------------
if __name__ == "__main__":
    LATENT, HIDDEN, CLASSES, BATCH = 32, 8, 10, 8   # fc1 width 128, fc2 width 64

    key = jax.random.PRNGKey(0)
    k_x, k_p = jax.random.split(key)
    params = init_params(k_p, LATENT, HIDDEN, CLASSES)
    x = jax.random.normal(k_x, (BATCH, LATENT), jnp.float32)

    # One-time weight preprocessing (bf16, pre-transposed, lane-padded, packed).
    kparams = jax.tree_util.tree_map(jax.block_until_ready,
                                     prepare_params(params, LATENT, HIDDEN, CLASSES))

    fwd = jax.jit(disnet_forward, static_argnames="num_classes")
    out = jax.block_until_ready(fwd(kparams, x, num_classes=CLASSES))

    assert out.shape == (BATCH, CLASSES), out.shape
    assert bool(jnp.all(jnp.isfinite(out)))

    ref = disnet_reference(params, x)
    max_err = float(jnp.max(jnp.abs(out - ref)))
    assert max_err < 2e-2, f"max abs err vs reference: {max_err}"

    print("KERNEL_OK")
</pallas_src>

<mosaic_0001>
module attributes {stable_mosaic.version = 11 : i64} {
  func.func @_disnet_kernel(%arg0: i32, %arg1: memref<8x32xbf16, #tpu.memory_space<vmem>>, %arg2: memref<32x128xbf16, #tpu.memory_space<vmem>>, %arg3: memref<128x128xbf16, #tpu.memory_space<vmem>>, %arg4: memref<128x128xbf16, #tpu.memory_space<vmem>>, %arg5: memref<8x128xf32, #tpu.memory_space<vmem>>, %arg6: memref<8x128xf32, #tpu.memory_space<vmem>>) attributes {dimension_semantics = [#tpu.dimension_semantics<arbitrary>], iteration_bounds = array<i64: 1>, scalar_prefetch = 0 : i64, scratch_operands = 0 : i64, tpu.core_type = #tpu.core_type<tc>, window_params = [{pipeline_mode = #tpu.pipeline_mode<synchronous>, transform_indices = @transform_0, window_bounds = array<i64: 8, 32>}, {pipeline_mode = #tpu.pipeline_mode<synchronous>, transform_indices = @transform_1, window_bounds = array<i64: 32, 128>}, {pipeline_mode = #tpu.pipeline_mode<synchronous>, transform_indices = @transform_2, window_bounds = array<i64: 128, 128>}, {pipeline_mode = #tpu.pipeline_mode<synchronous>, transform_indices = @transform_3, window_bounds = array<i64: 128, 128>}, {pipeline_mode = #tpu.pipeline_mode<synchronous>, transform_indices = @transform_4, window_bounds = array<i64: 8, 128>}, {pipeline_mode = #tpu.pipeline_mode<synchronous>, transform_indices = @transform_5, window_bounds = array<i64: 8, 128>}]} {
    %c0 = arith.constant 0 : index
    %c0_0 = arith.constant 0 : index
    %0 = vector.load %arg1[%c0, %c0_0] : memref<8x32xbf16, #tpu.memory_space<vmem>>, vector<8x32xbf16>
    %c0_1 = arith.constant 0 : index
    %c0_2 = arith.constant 0 : index
    %1 = vector.load %arg2[%c0_1, %c0_2] : memref<32x128xbf16, #tpu.memory_space<vmem>>, vector<32x128xbf16>
    %cst = arith.constant dense<0.000000e+00> : vector<8x128xf32>
    %2 = tpu.matmul %0, %1, %cst {dimension_numbers = #tpu.dot_dimension_numbers<[1], [0], [0], [1], [0, 0, 1, 1], [], []>} : vector<8x32xbf16>, vector<32x128xbf16>, vector<8x128xf32> -> vector<8x128xf32>
    %c0_3 = arith.constant 0 : index
    %c0_4 = arith.constant 0 : index
    %3 = vector.load %arg5[%c0_3, %c0_4] : memref<8x128xf32, #tpu.memory_space<vmem>>, vector<1x128xf32>
    %c1 = arith.constant 1 : index
    %c0_5 = arith.constant 0 : index
    %4 = vector.load %arg5[%c1, %c0_5] : memref<8x128xf32, #tpu.memory_space<vmem>>, vector<1x128xf32>
    %c2 = arith.constant 2 : index
    %c0_6 = arith.constant 0 : index
    %5 = vector.load %arg5[%c2, %c0_6] : memref<8x128xf32, #tpu.memory_space<vmem>>, vector<1x128xf32>
    %6 = vector.broadcast %3 : vector<1x128xf32> to vector<8x128xf32>
    %7 = arith.addf %2, %6 : vector<8x128xf32>
    %cst_7 = arith.constant 0.000000e+00 : f32
    %8 = vector.broadcast %cst_7 : f32 to vector<8x128xf32>
    %9 = arith.cmpf oge, %7, %8 : vector<8x128xf32>
    %cst_8 = arith.constant 0.00999999977 : f32
    %10 = vector.broadcast %cst_8 : f32 to vector<8x128xf32>
    %11 = arith.mulf %10, %7 : vector<8x128xf32>
    %12 = arith.select %9, %7, %11 : vector<8x128xi1>, vector<8x128xf32>
    %cst_9 = arith.constant dense<0.000000e+00> : vector<128xf32>
    %13 = vector.multi_reduction <add>, %12, %cst_9 [0] : vector<8x128xf32> to vector<128xf32>
    %14 = vector.shape_cast %13 : vector<128xf32> to vector<1x128xf32>
    %15 = arith.mulf %12, %12 : vector<8x128xf32>
    %cst_10 = arith.constant dense<0.000000e+00> : vector<128xf32>
    %16 = vector.multi_reduction <add>, %15, %cst_10 [0] : vector<8x128xf32> to vector<128xf32>
    %17 = vector.shape_cast %16 : vector<128xf32> to vector<1x128xf32>
    %cst_11 = arith.constant 1.250000e-01 : f32
    %18 = vector.broadcast %cst_11 : f32 to vector<1x128xf32>
    %19 = arith.mulf %14, %18 : vector<1x128xf32>
    %cst_12 = arith.constant 1.250000e-01 : f32
    %20 = vector.broadcast %cst_12 : f32 to vector<1x128xf32>
    %21 = arith.mulf %17, %20 : vector<1x128xf32>
    %22 = arith.mulf %19, %19 : vector<1x128xf32>
    %23 = arith.subf %21, %22 : vector<1x128xf32>
    %cst_13 = arith.constant 0.000000e+00 : f32
    %24 = vector.broadcast %cst_13 : f32 to vector<1x128xf32>
    %25 = arith.maximumf %23, %24 : vector<1x128xf32>
    %cst_14 = arith.constant 9.99999974E-6 : f32
    %26 = vector.broadcast %cst_14 : f32 to vector<1x128xf32>
    %27 = arith.addf %25, %26 : vector<1x128xf32>
    %28 = math.rsqrt %27 : vector<1x128xf32>
    %29 = arith.mulf %28, %4 : vector<1x128xf32>
    %30 = vector.broadcast %19 : vector<1x128xf32> to vector<8x128xf32>
    %31 = arith.subf %12, %30 : vector<8x128xf32>
    %32 = vector.broadcast %29 : vector<1x128xf32> to vector<8x128xf32>
    %33 = arith.mulf %31, %32 : vector<8x128xf32>
    %34 = vector.broadcast %5 : vector<1x128xf32> to vector<8x128xf32>
    %35 = arith.addf %33, %34 : vector<8x128xf32>
    %36 = arith.truncf %35 : vector<8x128xf32> to vector<8x128xbf16>
    %c0_15 = arith.constant 0 : index
    %c0_16 = arith.constant 0 : index
    %37 = vector.load %arg3[%c0_15, %c0_16] : memref<128x128xbf16, #tpu.memory_space<vmem>>, vector<128x128xbf16>
    %cst_17 = arith.constant dense<0.000000e+00> : vector<8x128xf32>
    %38 = tpu.matmul %36, %37, %cst_17 {dimension_numbers = #tpu.dot_dimension_numbers<[1], [0], [0], [1], [0, 0, 1, 1], [], []>} : vector<8x128xbf16>, vector<128x128xbf16>, vector<8x128xf32> -> vector<8x128xf32>
    %c3 = arith.constant 3 : index
    %c0_18 = arith.constant 0 : index
    %39 = vector.load %arg5[%c3, %c0_18] : memref<8x128xf32, #tpu.memory_space<vmem>>, vector<1x128xf32>
    %c4 = arith.constant 4 : index
    %c0_19 = arith.constant 0 : index
    %40 = vector.load %arg5[%c4, %c0_19] : memref<8x128xf32, #tpu.memory_space<vmem>>, vector<1x128xf32>
    %c5 = arith.constant 5 : index
    %c0_20 = arith.constant 0 : index
    %41 = vector.load %arg5[%c5, %c0_20] : memref<8x128xf32, #tpu.memory_space<vmem>>, vector<1x128xf32>
    %42 = vector.broadcast %39 : vector<1x128xf32> to vector<8x128xf32>
    %43 = arith.addf %38, %42 : vector<8x128xf32>
    %cst_21 = arith.constant 0.000000e+00 : f32
    %44 = vector.broadcast %cst_21 : f32 to vector<8x128xf32>
    %45 = arith.cmpf oge, %43, %44 : vector<8x128xf32>
    %cst_22 = arith.constant 0.00999999977 : f32
    %46 = vector.broadcast %cst_22 : f32 to vector<8x128xf32>
    %47 = arith.mulf %46, %43 : vector<8x128xf32>
    %48 = arith.select %45, %43, %47 : vector<8x128xi1>, vector<8x128xf32>
    %cst_23 = arith.constant dense<0.000000e+00> : vector<128xf32>
    %49 = vector.multi_reduction <add>, %48, %cst_23 [0] : vector<8x128xf32> to vector<128xf32>
    %50 = vector.shape_cast %49 : vector<128xf32> to vector<1x128xf32>
    %51 = arith.mulf %48, %48 : vector<8x128xf32>
    %cst_24 = arith.constant dense<0.000000e+00> : vector<128xf32>
    %52 = vector.multi_reduction <add>, %51, %cst_24 [0] : vector<8x128xf32> to vector<128xf32>
    %53 = vector.shape_cast %52 : vector<128xf32> to vector<1x128xf32>
    %cst_25 = arith.constant 1.250000e-01 : f32
    %54 = vector.broadcast %cst_25 : f32 to vector<1x128xf32>
    %55 = arith.mulf %50, %54 : vector<1x128xf32>
    %cst_26 = arith.constant 1.250000e-01 : f32
    %56 = vector.broadcast %cst_26 : f32 to vector<1x128xf32>
    %57 = arith.mulf %53, %56 : vector<1x128xf32>
    %58 = arith.mulf %55, %55 : vector<1x128xf32>
    %59 = arith.subf %57, %58 : vector<1x128xf32>
    %cst_27 = arith.constant 0.000000e+00 : f32
    %60 = vector.broadcast %cst_27 : f32 to vector<1x128xf32>
    %61 = arith.maximumf %59, %60 : vector<1x128xf32>
    %cst_28 = arith.constant 9.99999974E-6 : f32
    %62 = vector.broadcast %cst_28 : f32 to vector<1x128xf32>
    %63 = arith.addf %61, %62 : vector<1x128xf32>
    %64 = math.rsqrt %63 : vector<1x128xf32>
    %65 = arith.mulf %64, %40 : vector<1x128xf32>
    %66 = vector.broadcast %55 : vector<1x128xf32> to vector<8x128xf32>
    %67 = arith.subf %48, %66 : vector<8x128xf32>
    %68 = vector.broadcast %65 : vector<1x128xf32> to vector<8x128xf32>
    %69 = arith.mulf %67, %68 : vector<8x128xf32>
    %70 = vector.broadcast %41 : vector<1x128xf32> to vector<8x128xf32>
    %71 = arith.addf %69, %70 : vector<8x128xf32>
    %72 = arith.truncf %71 : vector<8x128xf32> to vector<8x128xbf16>
    %c0_29 = arith.constant 0 : index
    %c0_30 = arith.constant 0 : index
    %73 = vector.load %arg4[%c0_29, %c0_30] : memref<128x128xbf16, #tpu.memory_space<vmem>>, vector<128x128xbf16>
    %cst_31 = arith.constant dense<0.000000e+00> : vector<8x128xf32>
    %74 = tpu.matmul %72, %73, %cst_31 {dimension_numbers = #tpu.dot_dimension_numbers<[1], [0], [0], [1], [0, 0, 1, 1], [], []>} : vector<8x128xbf16>, vector<128x128xbf16>, vector<8x128xf32> -> vector<8x128xf32>
    %c6 = arith.constant 6 : index
    %c0_32 = arith.constant 0 : index
    %75 = vector.load %arg5[%c6, %c0_32] : memref<8x128xf32, #tpu.memory_space<vmem>>, vector<1x128xf32>
    %76 = vector.broadcast %75 : vector<1x128xf32> to vector<8x128xf32>
    %77 = arith.addf %74, %76 : vector<8x128xf32>
    %c0_33 = arith.constant 0 : index
    %c0_34 = arith.constant 0 : index
    %78 = vector.load %arg6[%c0_33, %c0_34] : memref<8x128xf32, #tpu.memory_space<vmem>>, vector<8x128xf32>
    tpu.vector_store %arg6[%c0_33, %c0_34], %77 {strides = array<i32>} : memref<8x128xf32, #tpu.memory_space<vmem>>, vector<8x128xf32>,
    return
  }
  func.func @transform_0(%arg0: i32) -> (i32, i32) {
    %c0_i32 = arith.constant 0 : i32
    %c0_i32_0 = arith.constant 0 : i32
    %c0_i32_1 = arith.constant 0 : i32
    return %c0_i32, %c0_i32_0 : i32, i32
  }
  func.func @transform_1(%arg0: i32) -> (i32, i32) {
    %c0_i32 = arith.constant 0 : i32
    %c0_i32_0 = arith.constant 0 : i32
    %c0_i32_1 = arith.constant 0 : i32
    return %c0_i32, %c0_i32_0 : i32, i32
  }
  func.func @transform_2(%arg0: i32) -> (i32, i32) {
    %c0_i32 = arith.constant 0 : i32
    %c0_i32_0 = arith.constant 0 : i32
    %c0_i32_1 = arith.constant 0 : i32
    return %c0_i32, %c0_i32_0 : i32, i32
  }
  func.func @transform_3(%arg0: i32) -> (i32, i32) {
    %c0_i32 = arith.constant 0 : i32
    %c0_i32_0 = arith.constant 0 : i32
    %c0_i32_1 = arith.constant 0 : i32
    return %c0_i32, %c0_i32_0 : i32, i32
  }
  func.func @transform_4(%arg0: i32) -> (i32, i32) {
    %c0_i32 = arith.constant 0 : i32
    %c0_i32_0 = arith.constant 0 : i32
    %c0_i32_1 = arith.constant 0 : i32
    return %c0_i32, %c0_i32_0 : i32, i32
  }
  func.func @transform_5(%arg0: i32) -> (i32, i32) {
    %c0_i32 = arith.constant 0 : i32
    %c0_i32_0 = arith.constant 0 : i32
    %c0_i32_1 = arith.constant 0 : i32
    return %c0_i32, %c0_i32_0 : i32, i32
  }
}

</mosaic_0001>

<bundles_post_ra>
// kernel: disnet_forward.1
= control target key start
LH: loop header
LB: loop body
LE: loop exit
PB: predicated region body
PF: predicated region fallthrough
CT: control target
= control target key end

     0   :  { %10 = vsyncpa [#allocation3], 0  ;;  %s644_s0 = inlined_call_operand.vmem [shape: bf16[8,32], index: 0, kind: input, shape index: {}]   ;;  %s645_s1 = inlined_call_operand.hbm [shape: bf16[32,128], index: 1, kind: input, shape index: {}]   ;;  %s646_s2 = inlined_call_operand.hbm [shape: bf16[128,128], index: 2, kind: input, shape index: {}]   ;;  %s647_s3 = inlined_call_operand.hbm [shape: bf16[128,128], index: 3, kind: input, shape index: {}]   ;;  %s648_s4 = inlined_call_operand.vmem [shape: f32[8,128], index: 4, kind: input, shape index: {}]   ;;  %s649_s5 = inlined_call_operand.hbm [shape: f32[8,128], index: 5, kind: output, shape index: {}]  }
   0x1   :  { %11 = vsyncpa [#allocation6], 0 }
   0x2   :  { %12 = vsyncpa [#allocation4], 0  ;;  %s32_s20 = sshll.u32 %s646_s2, 4  ;;  %s572_s21 = smov [#allocation5]   ;;  %s33_s20 = int_to_ptr.hbm [resolvable:$true] %s32_s20 }
   0x3   :  { %s34_s22 = sshll.u32 %s572_s21, 4  ;;  %s19_s25 = sshll.u32 %s645_s1, 4  ;;  %s35_s22 = int_to_ptr.vmem [resolvable:$true] %s34_s22  ;;  %s20_s25 = int_to_ptr.hbm [resolvable:$true] %s19_s25 }
   0x4   :  { %s573_s26 = smov 64   ;;  %s574_s27 = smov 4  }
   0x5   :  { %40 = dma.hbm_to_vmem [thread:$0]  %s33_s20, 1024, %s35_s22, [#allocation6], %s573_s26, %s573_s26, %s574_s27  }
   0x6   :  { %s575_s28 = smov [#allocation2]   ;;  %s45_s7 = sshll.u32 %s647_s3, 4  ;;  %s46_s7 = int_to_ptr.hbm [resolvable:$true] %s45_s7 }
   0x7   :  { %s21_s29 = sshll.u32 %s575_s28, 4  ;;  %s576_s2 = smov [#allocation7]   ;;  %s22_s29 = int_to_ptr.vmem [resolvable:$true] %s21_s29 }
   0x8   :  { %27 = dma.hbm_to_vmem [thread:$0]  %s20_s25, 256, %s22_s29, [#allocation3], %s573_s26, %s573_s26, %s574_s27  }
   0x9   :  { %s47_s8 = sshll.u32 %s576_s2, 4  ;;  %s48_s8 = int_to_ptr.vmem [resolvable:$true] %s47_s8 }
   0xa   :  { %53 = dma.hbm_to_vmem [thread:$0]  %s46_s7, 1024, %s48_s8, [#allocation6], %s573_s26, %s573_s26, %s574_s27  }
   0xb   :  { %566 = dma.done.wait [#allocation3], 256  }
   0xc   :  { %567 = vsyncadd [#allocation3], 4294967040 }
   0xd   :  { %568 = dma.done.wait [#allocation6], 2048  }
   0xe   :  { %569 = vsyncadd [#allocation6], 4294965248  ;;  %v438_v0 = vld [vmem:[#allocation2 + $0x8] sm:$0xff]  ;;  %v437_v1 = vld [vmem:[#allocation2] sm:$0xff]  ;;  %vm90_vm0 = vcmask 261120   ;;  %s577_s22 = smov [#allocation8]  }
   0xf   :  { %100 = vmatpush.bf16.msra.mxu0 %v438_v0  ;;  %v69_v2 = vld [vmem:[%s644_s0] sm:$0xf]  ;;  %v446_v3 = vld [vmem:[#allocation5 + $0x38] sm:$0xff]  ;;  %v444_v5 = vld [vmem:[#allocation5 + $0x28] sm:$0xff]  ;;  %s351_s23 = sshll.u32 %s577_s22, 4  ;;  %s353_s26 = sshll.u32 %s649_s5, 4  ;;  %s352_s23 = int_to_ptr.vmem [resolvable:$true] %s351_s23  ;;  %s354_s26 = int_to_ptr.hbm [resolvable:$true] %s353_s26 }
  0x10   :  { %214 = vmatpush.bf16.msra.mxu1 %v446_v3  ;;  %v445_v4 = vld [vmem:[#allocation5 + $0x30] sm:$0xff]  ;;  %v443_v6 = vld [vmem:[#allocation5 + $0x20] sm:$0xff]  ;;  %v442_v8 = vld [vmem:[#allocation5 + $0x18] sm:$0xff] }
  0x11   :  { %v461_v7 = vld [vmem:[%s648_s4] ss:$0 sm:$0xff]  ;;  %v440_v16 = vld [vmem:[#allocation5 + $0x8] sm:$0xff]  ;;  %v439_v22 = vld [vmem:[#allocation5] sm:$0xff] }
  0x12   :  { %v441_v11 = vld [vmem:[#allocation5 + $0x10] sm:$0xff]  ;;  %v454_v51 = vld [vmem:[#allocation7 + $0x38] sm:$0xff]  ;;  %v452_v53 = vld [vmem:[#allocation7 + $0x28] sm:$0xff] }
  0x13   :  { %101 = vmatpush.bf16.msra.mxu0 %v437_v1  ;;  %v75_v41 = vld [vmem:[%s648_s4 + $0x1] sm:$0x1]  ;;  %v462_v47 = vld [vmem:[%s648_s4 + $0x2] ss:$0 sm:$0xff]  ;;  %332 = vmatpush.bf16.msra.mxu2 %v454_v51  ;;  %v451_v54 = vld [vmem:[#allocation7 + $0x20] sm:$0xff] }
  0x14   :  { %215 = vmatpush.bf16.msra.mxu1 %v445_v4  ;;  %v453_v52 = vld [vmem:[#allocation7 + $0x30] sm:$0xff]  ;;  %v450_v56 = vld [vmem:[#allocation7 + $0x18] sm:$0xff]  ;;  %v448_v0 = vld [vmem:[#allocation7 + $0x8] sm:$0xff] }
  0x15   :  { %v463_v55 = vld [vmem:[%s648_s4 + $0x3] ss:$0 sm:$0xff] }
  0x16   :  { %372 = vmatmul.msk.bf16.vlgmr.msra.gmra.mxu0 %vm90_vm0, %v69_v2  ;;  %v449_v59 = vld [vmem:[#allocation7 + $0x10] sm:$0xff] }
  0x17   :  { %333 = vmatpush.bf16.msra.mxu2 %v453_v52 }
  0x18   :  { %216 = vmatpush.bf16.msra.mxu1 %v444_v5 }
  0x1b   :  { %334 = vmatpush.bf16.msra.mxu2 %v452_v53 }
  0x1c   :  { %217 = vmatpush.bf16.msra.mxu1 %v443_v6  ;;  %v447_v6 = vld [vmem:[#allocation7] sm:$0xff] }
  0x1f   :  { %335 = vmatpush.bf16.msra.mxu2 %v451_v54 }
  0x20   :  { %218 = vmatpush.bf16.msra.mxu1 %v442_v8 }
  0x23   :  { %336 = vmatpush.bf16.msra.mxu2 %v450_v56 }
  0x24   :  { %219 = vmatpush.bf16.msra.mxu1 %v441_v11 }
  0x27   :  { %337 = vmatpush.bf16.msra.mxu2 %v449_v59 }
  0x28   :  { %220 = vmatpush.bf16.msra.mxu1 %v440_v16 }
  0x2b   :  { %338 = vmatpush.bf16.msra.mxu2 %v448_v0 }
  0x2c   :  { %221 = vmatpush.bf16.msra.mxu1 %v439_v22 }
  0x2f   :  { %339 = vmatpush.bf16.msra.mxu2 %v447_v6 }
  0x93   :  { %v103_v9 = vpop.f32.mrf.mxu0 }
  0x94   :  { %v104_v10 = vadd.f32 %v461_v7, %v103_v9 }
  0x96   :  { %vm107_vm1 = vcmp.ge.f32.partialorder %v104_v10, 0.0  ;;  %v108_v12 = vmul.f32 0.01, %v104_v10 }
  0x98   :  { %v109_v13 = vsel %vm107_vm1, %v104_v10, %v108_v12 }
  0x99   :  { %v110_v14 = vrot.slane %v109_v13, 4  ;;  %v116_v15 = vmul.f32 %v109_v13, %v109_v13 }
  0x9b   :  { %v111_v17 = vadd.f32 %v110_v14, %v109_v13  ;;  %v117_v18 = vrot.slane %v116_v15, 4  ;;  %v105_v19 = vpop.f32.mrf.mxu0 }
  0x9d   :  { %v112_v20 = vrot.slane %v111_v17, 2  ;;  %v118_v21 = vadd.f32 %v117_v18, %v116_v15 }
  0x9f   :  { %v119_v23 = vrot.slane %v118_v21, 2  ;;  %v113_v24 = vadd.f32 %v112_v20, %v111_v17 }
  0xa1   :  { %v120_v25 = vadd.f32 %v119_v23, %v118_v21  ;;  %v114_v26 = vrot.slane %v113_v24, 1 }
  0xa3   :  { %v121_v27 = vrot.slane %v120_v25, 1  ;;  %v115_v28 = vadd.f32 %v114_v26, %v113_v24 }
  0xa5   :  { %v122_v29 = vadd.f32 %v121_v27, %v120_v25  ;;  %v123_v30 = vmul.f32 0.125, %v115_v28  ;;  %v163_v25 = vld [vmem:[%s648_s4 + $0x4] sm:$0x1] }
  0xa7   :  { %v124_v31 = vmul.f32 0.125, %v122_v29  ;;  %v125_v32 = vmul.f32 %v123_v30, %v123_v30  ;;  %v140_v45 = vsub.f32 %v109_v13, %v123_v30 }
  0xa9   :  { %v126_v33 = vsub.f32 %v124_v31, %v125_v32  ;;  %v464_v31 = vld [vmem:[%s648_s4 + $0x5] ss:$0 sm:$0xff] }
  0xab   :  { %v127_v34 = vmax.f32 %v126_v33, 0.0 }
  0xad   :  { %v128_v35 = vadd.f32 1e-05, %v127_v34 }
  0xaf   :  { %466 = vrsqrt.f32 %v128_v35  ;;  %vm135_vm3 = vweird.f32 %v128_v35 }
  0xb5   :  { %v467_v36 = vpop.eup %466 }
  0xb6   :  { %v130_v37 = vmul.f32 %v467_v36, %v128_v35  ;;  %vm136_vm2 = vweird.f32 %v467_v36  ;;  %v465_v35 = vld [vmem:[%s648_s4 + $0x6] ss:$0 sm:$0xff] }
  0xb7   :  { %vm137_vm4 = vmor %vm135_vm3, %vm136_vm2 }
  0xb8   :  { %v131_v38 = vmul.f32 %v467_v36, %v130_v37 }
  0xba   :  { %v132_v39 = vmul.f32 0.5, %v131_v38 }
  0xbc   :  { %v133_v40 = vsub.f32 1.5, %v132_v39 }
  0xbe   :  { %v134_v42 = vmul.f32 %v467_v36, %v133_v40 }
  0xc0   :  { %v138_v43 = vsel %vm137_vm4, %v467_v36, %v134_v42 }
  0xc1   :  { %v139_v44 = vmul.f32 %v138_v43, %v75_v41 }
  0xc3   :  { %v141_v46 = vperm.slane %v139_v44, 0 }
  0xc5   :  { %v142_v48 = vmul.f32 %v141_v46, %v140_v45 }
  0xc7   :  { %v144_v49 = vadd.f32 %v462_v47, %v142_v48 }
  0xc9   :  { %v145_v50 = vpack.c.bf16 %v144_v49, %v144_v49 }
  0xcb   :  { %222 = vmatmul.bf16.vlgmr.msra.gmra.mxu1 %v145_v50 }
 0x148   :  { %v223_v57 = vpop.f32.mrf.mxu1 }
 0x149   :  { %v224_v58 = vadd.f32 %v463_v55, %v223_v57 }
 0x14b   :  { %vm227_vm5 = vcmp.ge.f32.partialorder %v224_v58, 0.0  ;;  %v228_v60 = vmul.f32 0.01, %v224_v58 }
 0x14d   :  { %v229_v61 = vsel %vm227_vm5, %v224_v58, %v228_v60 }
 0x14e   :  { %v230_v62 = vrot.slane %v229_v61, 4  ;;  %v236_v63 = vmul.f32 %v229_v61, %v229_v61 }
 0x150   :  { %v231_v1 = vadd.f32 %v230_v62, %v229_v61  ;;  %v237_v2 = vrot.slane %v236_v63, 4  ;;  %v225_v3 = vpop.f32.mrf.mxu1 }
 0x152   :  { %v232_v4 = vrot.slane %v231_v1, 2  ;;  %v238_v5 = vadd.f32 %v237_v2, %v236_v63 }
 0x154   :  { %v239_v7 = vrot.slane %v238_v5, 2  ;;  %v233_v8 = vadd.f32 %v232_v4, %v231_v1 }
 0x156   :  { %v240_v9 = vadd.f32 %v239_v7, %v238_v5  ;;  %v234_v10 = vrot.slane %v233_v8, 1 }
 0x158   :  { %v241_v11 = vrot.slane %v240_v9, 1  ;;  %v235_v12 = vadd.f32 %v234_v10, %v233_v8 }
 0x15a   :  { %v242_v13 = vadd.f32 %v241_v11, %v240_v9  ;;  %v243_v14 = vmul.f32 0.125, %v235_v12 }
 0x15c   :  { %v244_v15 = vmul.f32 0.125, %v242_v13  ;;  %v245_v16 = vmul.f32 %v243_v14, %v243_v14  ;;  %v260_v29 = vsub.f32 %v229_v61, %v243_v14 }
 0x15e   :  { %v246_v17 = vsub.f32 %v244_v15, %v245_v16 }
 0x160   :  { %v247_v18 = vmax.f32 %v246_v17, 0.0 }
 0x162   :  { %v248_v19 = vadd.f32 1e-05, %v247_v18 }
 0x164   :  { %468 = vrsqrt.f32 %v248_v19  ;;  %vm255_vm7 = vweird.f32 %v248_v19 }
 0x16a   :  { %v469_v20 = vpop.eup %468 }
 0x16b   :  { %v250_v21 = vmul.f32 %v469_v20, %v248_v19  ;;  %vm256_vm6 = vweird.f32 %v469_v20 }
 0x16c   :  { %vm257_vm8 = vmor %vm255_vm7, %vm256_vm6 }
 0x16d   :  { %v251_v22 = vmul.f32 %v469_v20, %v250_v21 }
 0x16f   :  { %v252_v23 = vmul.f32 0.5, %v251_v22 }
 0x171   :  { %v253_v24 = vsub.f32 1.5, %v252_v23 }
 0x173   :  { %v254_v26 = vmul.f32 %v469_v20, %v253_v24 }
 0x175   :  { %v258_v27 = vsel %vm257_vm8, %v469_v20, %v254_v26 }
 0x176   :  { %v259_v28 = vmul.f32 %v258_v27, %v163_v25 }
 0x178   :  { %v261_v30 = vperm.slane %v259_v28, 0 }
 0x17a   :  { %v262_v32 = vmul.f32 %v261_v30, %v260_v29 }
 0x17c   :  { %v264_v33 = vadd.f32 %v464_v31, %v262_v32 }
 0x17e   :  { %v265_v34 = vpack.c.bf16 %v264_v33, %v264_v33 }
 0x180   :  { %340 = vmatmul.bf16.vlgmr.msra.gmra.mxu2 %v265_v34 }
 0x203   :  { %v341_v36 = vpop.f32.mrf.mxu2 }
 0x204   :  { %v342_v37 = vadd.f32 %v465_v35, %v341_v36 }
 0x206   :  { %345 = vst [vmem:[#allocation8] sm:$0xff] %v342_v37 }
 0x207   :  { %356 = dma.vmem_to_hbm [thread:$0]  %s352_s23, 128, %s354_s26, [#allocation4]  }
 0x20b   :  { %v343_v38 = vpop.f32.mrf.mxu2 }
 0x20c   :  { %570 = dma.done.wait [#allocation4], 128  }
 0x20d   :  { %571 = vsyncadd [#allocation4], 4294967168 }
 0x20e   :  { %361 = vsyncpa [#allocation3], 1 }
 0x20f   :  { %362 = vsyncpa [#allocation6], 1 }
 0x210   :  { %363 = vsyncpa [#allocation4], 1 }

</bundles_post_ra>
